<compile_context>
chip_gen: v6e
topology: v6e:2x2x1
jax: 0.10.0
libtpu: 0.0.40
codegen_flags: <defaults>
</compile_context>

<pallas_src>
import functools
import math

import jax
import jax.numpy as jnp
import numpy as np
from jax import lax
from jax.experimental import pallas as pl
from jax.experimental.pallas import tpu as pltpu


def _round_up(n, m):
    return ((n + m - 1) // m) * m


def _conv1d_kernel(x_hbm, w_ref, b_ref, o_ref, xbuf, sem, *maybe_xstk,
                   K, dilation, tile_t, tile_in, fuse_k):
    # x_hbm : (B, C_in_p, T_in_p)            full padded input, resident in HBM
    # w_ref : fused   -> (c_out_blk, K*C_in_p)   K-folded weight block (VMEM)
    #         per-tap -> (K, c_out_blk, C_in_p)
    # b_ref : (c_out_blk, 1)                  bias (zeros when bias=False)
    # o_ref : (1, c_out_blk, tile_t)          lane-dense output tile
    # xbuf  : (2, C_in_p, tile_in)            double-buffered haloed input window
    # sem   : DMA semaphores, shape (2,)
    # xstk  : (K*C_in_p, tile_t)              only present when fuse_k
    bi = pl.program_id(0)
    tj = pl.program_id(2)
    n_t = pl.num_programs(2)
    slot = tj & 1

    def window_copy(t_idx, s):
        t0 = pl.multiple_of(t_idx * tile_t, 128)
        return pltpu.make_async_copy(
            x_hbm.at[bi, :, pl.ds(t0, tile_in)], xbuf.at[s], sem.at[s])

    # Prime the pipeline on the first time-tile of this (batch, c_out-block) row.
    @pl.when(tj == 0)
    def _():
        window_copy(tj, slot).start()

    # Wait for the current window (prefetched by the previous step or primed above),
    # then immediately queue the next tile's window so its HBM->VMEM latency hides
    # under this tile's compute.
    window_copy(tj, slot).wait()

    @pl.when(tj + 1 < n_t)
    def _():
        window_copy(tj + 1, 1 - slot).start()

    c_in_p = xbuf.shape[1]

    if fuse_k:
        # Deep contraction: stack the K shifted windows along the sublane axis and
        # do a single MXU dot.  Only used when K*C_in_p is large enough to fill the
        # MXU contraction depth.
        xstk = maybe_xstk[0]
        for kk in range(K):
            xstk[kk * c_in_p:(kk + 1) * c_in_p, :] = (
                xbuf[slot, :, pl.ds(kk * dilation, tile_t)])
        acc = jnp.dot(w_ref[...], xstk[...], preferred_element_type=jnp.float32)
    else:
        # Small C_in: accumulate K shallow dots straight from the input window.
        # No stacking copy through VMEM; dots are back-to-back into one accumulator.
        acc = jnp.dot(w_ref[0], xbuf[slot, :, pl.ds(0, tile_t)],
                      preferred_element_type=jnp.float32)
        for kk in range(1, K):
            acc = acc + jnp.dot(w_ref[kk],
                                xbuf[slot, :, pl.ds(kk * dilation, tile_t)],
                                preferred_element_type=jnp.float32)

    o_ref[0, :, :] = (acc + b_ref[...]).astype(o_ref.dtype)


def conv_norm_forward(x, weight, bias, *, stride=1, padding=None, dilation=1,
                      tile_t_max=1024, compute_dtype=jnp.bfloat16,
                      vmem_budget_bytes=36 * 1024 * 1024):
    """Pallas implementation of ConvNorm.forward (nn.Conv1d).

    x:      (B, C_in, T)      float32
    weight: (C_out, C_in, K)  float32
    bias:   (C_out,)          float32 (or None)
    compute_dtype: MXU input dtype (bf16 recommended on v6e/v7x; pass jnp.float32
                   for exact parity with the f32 reference).  Accumulation is f32.
    """
    b, c_in, t = x.shape
    c_out, c_in_w, k = weight.shape
    assert c_in == c_in_w
    out_dtype = x.dtype

    if padding is None:
        assert k % 2 == 1
        padding = int(dilation * (k - 1) / 2)

    if stride != 1:
        # TODO(synk): replace this wrapper-level im2col (materializes ~K x the
        # decimated input in HBM) with per-tap strided in-kernel DMA
        # (x_hbm.at[bi, :, pl.ds(start + kk*dilation, tile_t, stride)]).
        x_pad = jnp.pad(x, ((0, 0), (0, 0), (padding, padding)))
        t_pad = t + 2 * padding
        t_out = (t_pad - dilation * (k - 1) - 1) // stride + 1
        taps = [
            lax.slice(x_pad, (0, 0, kk * dilation),
                      (b, c_in, kk * dilation + (t_out - 1) * stride + 1),
                      (1, 1, stride))
            for kk in range(k)
        ]
        x_dec = jnp.concatenate(taps, axis=1)                          # (B, K*C_in, T_out)
        w_dec = jnp.transpose(weight, (0, 2, 1)).reshape(c_out, k * c_in)[:, :, None]
        return conv_norm_forward(x_dec, w_dec, bias, stride=1, padding=0,
                                 dilation=1, tile_t_max=tile_t_max,
                                 compute_dtype=compute_dtype,
                                 vmem_budget_bytes=vmem_budget_bytes)

    # ---- stride == 1 main path ----
    t_pad = t + 2 * padding
    halo = dilation * (k - 1)
    t_out = t_pad - halo
    assert t_out >= 1

    c_in_p = _round_up(c_in, 8)                      # sublane-aligned channel pad
    c_out_block = min(256, _round_up(c_out, 8))      # 256 fills the v6e/v7x MXU M dim
    c_out_p = _round_up(c_out, c_out_block)
    n_co = c_out_p // c_out_block

    # Deep-contraction (K-fused) path only when it actually fills the MXU depth.
    fuse_k = (k > 1) and (k * c_in_p >= 256)

    x_bytes = jnp.dtype(compute_dtype).itemsize
    out_bytes = jnp.dtype(out_dtype).itemsize

    def vmem_est(tt):
        ti = _round_up(tt + halo, 128)
        est = 2 * c_in_p * ti * x_bytes                    # double-buffered xbuf
        est += 2 * c_out_block * k * c_in_p * x_bytes      # weight block (pipelined)
        est += 2 * c_out_block * tt * out_bytes            # output block (pipelined)
        if fuse_k:
            est += k * c_in_p * tt * x_bytes               # stacked operand
        return est

    # Biggest lane-dense time tile whose VMEM footprint fits the budget.
    tile_t = min(_round_up(tile_t_max, 128), _round_up(t_out, 128))
    while tile_t > 128 and vmem_est(tile_t) > vmem_budget_bytes:
        tile_t -= 128

    tile_in = _round_up(tile_t + halo, 128)          # aligned DMA width
    t_out_p = _round_up(t_out, tile_t)
    n_t = t_out_p // tile_t
    t_in_p = (n_t - 1) * tile_t + tile_in

    # Single pad: conv left-pad + channel pad + tail pad for full tiles / halo.
    # TODO(synk): fold the time padding into masked first/last-tile DMAs to avoid
    # this full HBM copy of the input.
    x_pad = jnp.pad(x, ((0, 0), (0, c_in_p - c_in),
                        (padding, t_in_p - t - padding))).astype(compute_dtype)

    if fuse_k:
        w_t = jnp.transpose(weight, (0, 2, 1))                       # (C_out, K, C_in)
        w_t = jnp.pad(w_t, ((0, c_out_p - c_out), (0, 0), (0, c_in_p - c_in)))
        w_arr = w_t.reshape(c_out_p, k * c_in_p).astype(compute_dtype)
        w_spec = pl.BlockSpec((c_out_block, k * c_in_p), lambda bi, co, tj: (co, 0))
    else:
        w_t = jnp.transpose(weight, (2, 0, 1))                       # (K, C_out, C_in)
        w_t = jnp.pad(w_t, ((0, 0), (0, c_out_p - c_out), (0, c_in_p - c_in)))
        w_arr = w_t.astype(compute_dtype)
        w_spec = pl.BlockSpec((k, c_out_block, c_in_p), lambda bi, co, tj: (0, co, 0))

    if bias is None:
        bias_arr = jnp.zeros((c_out_p, 1), jnp.float32)
    else:
        bias_arr = jnp.pad(bias.astype(jnp.float32),
                           (0, c_out_p - c_out)).reshape(c_out_p, 1)

    scratch = [pltpu.VMEM((2, c_in_p, tile_in), compute_dtype),
               pltpu.SemaphoreType.DMA((2,))]
    if fuse_k:
        scratch.append(pltpu.VMEM((k * c_in_p, tile_t), compute_dtype))

    kernel = functools.partial(
        _conv1d_kernel, K=k, dilation=dilation, tile_t=tile_t,
        tile_in=tile_in, fuse_k=fuse_k)

    out = pl.pallas_call(
        kernel,
        out_shape=jax.ShapeDtypeStruct((b, c_out_p, t_out_p), out_dtype),
        grid_spec=pltpu.PrefetchScalarGridSpec(
            num_scalar_prefetch=0,
            grid=(b, n_co, n_t),
            in_specs=[
                pl.BlockSpec(memory_space=pl.ANY),              # x stays in HBM
                w_spec,
                pl.BlockSpec((c_out_block, 1), lambda bi, co, tj: (co, 0)),
            ],
            out_specs=pl.BlockSpec((1, c_out_block, tile_t),
                                   lambda bi, co, tj: (bi, co, tj)),
            scratch_shapes=scratch,
        ),
        compiler_params=pltpu.CompilerParams(
            dimension_semantics=("parallel", "parallel", "arbitrary"),
            vmem_limit_bytes=48 * 1024 * 1024,   # <= v7x 64 MiB; well under v5e/v6e 128 MiB
        ),
    )(x_pad, w_arr, bias_arr)

    if c_out_p != c_out or t_out_p != t_out:
        # TODO(synk): fuse this crop into the consumer to avoid an HBM round trip.
        out = out[:, :c_out, :t_out]
    return out


def init_conv_norm_params(key, input_size, output_size, kernel_size,
                          w_init_gain="linear"):
    """Deterministic xavier_uniform init matching ConvNorm.__init__."""
    kw, kb = jax.random.split(key)
    gain = 1.0  # nn.init.calculate_gain('linear') == 1.0
    fan_in = input_size * kernel_size
    fan_out = output_size * kernel_size
    bound = gain * math.sqrt(6.0 / (fan_in + fan_out))
    weight = jax.random.uniform(
        kw, (output_size, input_size, kernel_size), jnp.float32, -bound, bound)
    # PyTorch Conv1d default bias init: U(-1/sqrt(fan_in), 1/sqrt(fan_in))
    b_bound = 1.0 / math.sqrt(fan_in)
    bias = jax.random.uniform(kb, (output_size,), jnp.float32, -b_bound, b_bound)
    return weight, bias


def _reference_conv1d(x, weight, bias, *, stride=1, padding=0, dilation=1):
    out = lax.conv_general_dilated(
        x, weight,
        window_strides=(stride,),
        padding=[(padding, padding)],
        rhs_dilation=(dilation,),
        dimension_numbers=("NCH", "OIH", "NCH"),
    )
    return out + bias.reshape(1, -1, 1)


if __name__ == "__main__":
    key = jax.random.PRNGKey(0)
    k_x, k_x2, k_p1, k_p2, k_p3 = jax.random.split(key, 5)

    # Small shapes consistent with ConvNorm(input_size=4, output_size=8, kernel_size=3)
    B, C_IN, T = 2, 4, 16
    C_OUT, K = 8, 3
    x = jax.random.normal(k_x, (B, C_IN, T), jnp.float32)

    # 1) kernel_size=3, exact f32 compute (per-tap MXU path)
    w3, b3 = init_conv_norm_params(k_p1, C_IN, C_OUT, K)
    y = jax.block_until_ready(conv_norm_forward(x, w3, b3, compute_dtype=jnp.float32))
    y_ref = _reference_conv1d(x, w3, b3, stride=1, padding=(K - 1) // 2)
    np.testing.assert_allclose(np.asarray(y), np.asarray(y_ref), rtol=1e-5, atol=1e-5)

    # 2) kernel_size=1 (ConvNorm default config), exact f32
    w1, b1 = init_conv_norm_params(k_p2, C_IN, C_OUT, 1)
    y = jax.block_until_ready(conv_norm_forward(x, w1, b1, compute_dtype=jnp.float32))
    y_ref = _reference_conv1d(x, w1, b1, stride=1, padding=0)
    np.testing.assert_allclose(np.asarray(y), np.asarray(y_ref), rtol=1e-5, atol=1e-5)

    # 3) stride=2, exact f32
    y = jax.block_until_ready(
        conv_norm_forward(x, w3, b3, stride=2, padding=1, compute_dtype=jnp.float32))
    y_ref = _reference_conv1d(x, w3, b3, stride=2, padding=1)
    np.testing.assert_allclose(np.asarray(y), np.asarray(y_ref), rtol=1e-5, atol=1e-5)

    # 4) multi-tile time axis (exercises the double-buffered DMA prefetch chain)
    T2 = 520
    x_long = jax.random.normal(k_x2, (B, C_IN, T2), jnp.float32)
    y = jax.block_until_ready(
        conv_norm_forward(x_long, w3, b3, compute_dtype=jnp.float32, tile_t_max=128))
    y_ref = _reference_conv1d(x_long, w3, b3, stride=1, padding=1)
    np.testing.assert_allclose(np.asarray(y), np.asarray(y_ref), rtol=1e-5, atol=1e-5)

    # 5) larger C_in with dilation=2 (exercises the K-fused deep-contraction path)
    C_IN3, C_OUT3, T3, DIL = 128, 16, 256, 2
    x3 = jax.random.normal(k_x2, (B, C_IN3, T3), jnp.float32)
    w5, b5 = init_conv_norm_params(k_p3, C_IN3, C_OUT3, K)
    y = jax.block_until_ready(
        conv_norm_forward(x3, w5, b5, dilation=DIL, compute_dtype=jnp.float32))
    y_ref = _reference_conv1d(x3, w5, b5, stride=1, padding=DIL, dilation=DIL)
    np.testing.assert_allclose(np.asarray(y), np.asarray(y_ref), rtol=2e-5, atol=2e-5)

    # 6) default bf16 compute (recommended on v6e/v7x), looser tolerance
    y = jax.block_until_ready(conv_norm_forward(x, w3, b3))
    y_ref = _reference_conv1d(x, w3, b3, stride=1, padding=1)
    np.testing.assert_allclose(np.asarray(y), np.asarray(y_ref), rtol=5e-2, atol=5e-2)

    print("KERNEL_OK")
</pallas_src>

<mosaic_0001>
module attributes {stable_mosaic.version = 11 : i64} {
  func.func @_conv1d_kernel(%arg0: i32, %arg1: i32, %arg2: i32, %arg3: memref<2x8x256xf32, #tpu.memory_space<any>>, %arg4: memref<3x8x8xf32, #tpu.memory_space<vmem>>, %arg5: memref<8x1xf32, #tpu.memory_space<vmem>>, %arg6: memref<1x8x128xf32, #tpu.memory_space<vmem>>, %arg7: memref<2x8x256xf32, #tpu.memory_space<vmem>>, %arg8: memref<2x!tpu.dma_semaphore, #tpu.memory_space<semaphore_mem>>) attributes {dimension_semantics = [#tpu.dimension_semantics<parallel>, #tpu.dimension_semantics<parallel>, #tpu.dimension_semantics<arbitrary>], iteration_bounds = array<i64: 2, 1, 1>, scalar_prefetch = 0 : i64, scratch_operands = 2 : i64, tpu.core_type = #tpu.core_type<tc>, window_params = [{}, {transform_indices = @transform_1, window_bounds = array<i64: 3, 8, 8>}, {transform_indices = @transform_2, window_bounds = array<i64: 8, 1>}, {transform_indices = @transform_3, window_bounds = array<i64: 1, 8, 128>}]} {
    %c1_i32 = arith.constant 1 : i32
    %0 = arith.andi %arg2, %c1_i32 : i32
    %c0_i32 = arith.constant 0 : i32
    %1 = arith.cmpi eq, %arg2, %c0_i32 : i32
    %2 = arith.extui %1 : i1 to i32
    %c0_i32_0 = arith.constant 0 : i32
    %3 = arith.cmpi ne, %2, %c0_i32_0 : i32
    scf.if %3 {
      %c128_i32_26 = arith.constant 128 : i32
      %42 = arith.muli %arg2, %c128_i32_26 : i32
      %43 = tpu.assume_multiple %42, 128 : i32
      %c0_i32_27 = arith.constant 0 : i32
      %44 = tpu.memref_slice %arg3[%arg0, %c0_i32_27, %43] : memref<2x8x256xf32, #tpu.memory_space<any>> -> memref<1x8x256xf32, #tpu.memory_space<any>>
      %45 = tpu.memref_squeeze %44 : memref<1x8x256xf32, #tpu.memory_space<any>> -> memref<8x256xf32, #tpu.memory_space<any>>
      %c0_i32_28 = arith.constant 0 : i32
      %c0_i32_29 = arith.constant 0 : i32
      %46 = tpu.memref_slice %arg7[%0, %c0_i32_28, %c0_i32_29] : memref<2x8x256xf32, #tpu.memory_space<vmem>> -> memref<1x8x256xf32, #tpu.memory_space<vmem>>
      %47 = tpu.memref_squeeze %46 : memref<1x8x256xf32, #tpu.memory_space<vmem>> -> memref<8x256xf32, #tpu.memory_space<vmem>>
      %48 = tpu.memref_slice %arg8[%0] : memref<2x!tpu.dma_semaphore, #tpu.memory_space<semaphore_mem>> -> memref<1x!tpu.dma_semaphore, #tpu.memory_space<semaphore_mem>>
      %49 = tpu.memref_squeeze %48 : memref<1x!tpu.dma_semaphore, #tpu.memory_space<semaphore_mem>> -> memref<!tpu.dma_semaphore, #tpu.memory_space<semaphore_mem>>
      tpu.enqueue_dma source(%45 : memref<8x256xf32, #tpu.memory_space<any>>) target(%47 : memref<8x256xf32, #tpu.memory_space<vmem>>) target_semaphore(%49 : memref<!tpu.dma_semaphore, #tpu.memory_space<semaphore_mem>>)
    } else {
    }
    %c128_i32 = arith.constant 128 : i32
    %4 = arith.muli %arg2, %c128_i32 : i32
    %5 = tpu.assume_multiple %4, 128 : i32
    %c0_i32_1 = arith.constant 0 : i32
    %6 = tpu.memref_slice %arg3[%arg0, %c0_i32_1, %5] : memref<2x8x256xf32, #tpu.memory_space<any>> -> memref<1x8x256xf32, #tpu.memory_space<any>>
    %7 = tpu.memref_squeeze %6 : memref<1x8x256xf32, #tpu.memory_space<any>> -> memref<8x256xf32, #tpu.memory_space<any>>
    %c0_i32_2 = arith.constant 0 : i32
    %c0_i32_3 = arith.constant 0 : i32
    %8 = tpu.memref_slice %arg7[%0, %c0_i32_2, %c0_i32_3] : memref<2x8x256xf32, #tpu.memory_space<vmem>> -> memref<1x8x256xf32, #tpu.memory_space<vmem>>
    %9 = tpu.memref_squeeze %8 : memref<1x8x256xf32, #tpu.memory_space<vmem>> -> memref<8x256xf32, #tpu.memory_space<vmem>>
    %10 = tpu.memref_slice %arg8[%0] : memref<2x!tpu.dma_semaphore, #tpu.memory_space<semaphore_mem>> -> memref<1x!tpu.dma_semaphore, #tpu.memory_space<semaphore_mem>>
    %11 = tpu.memref_squeeze %10 : memref<1x!tpu.dma_semaphore, #tpu.memory_space<semaphore_mem>> -> memref<!tpu.dma_semaphore, #tpu.memory_space<semaphore_mem>>
    tpu.wait_dma2 semaphore(%11 : memref<!tpu.dma_semaphore, #tpu.memory_space<semaphore_mem>>) src(%7 : memref<8x256xf32, #tpu.memory_space<any>>) dst(%9 : memref<8x256xf32, #tpu.memory_space<vmem>>)
    %c1_i32_4 = arith.constant 1 : i32
    %12 = arith.addi %arg2, %c1_i32_4 : i32
    %c1_i32_5 = arith.constant 1 : i32
    %13 = arith.cmpi slt, %12, %c1_i32_5 : i32
    %14 = arith.extui %13 : i1 to i32
    %c0_i32_6 = arith.constant 0 : i32
    %15 = arith.cmpi ne, %14, %c0_i32_6 : i32
    scf.if %15 {
      %c1_i32_26 = arith.constant 1 : i32
      %42 = arith.addi %arg2, %c1_i32_26 : i32
      %c1_i32_27 = arith.constant 1 : i32
      %43 = arith.subi %c1_i32_27, %0 : i32
      %c128_i32_28 = arith.constant 128 : i32
      %44 = arith.muli %42, %c128_i32_28 : i32
      %45 = tpu.assume_multiple %44, 128 : i32
      %c0_i32_29 = arith.constant 0 : i32
      %46 = tpu.memref_slice %arg3[%arg0, %c0_i32_29, %45] : memref<2x8x256xf32, #tpu.memory_space<any>> -> memref<1x8x256xf32, #tpu.memory_space<any>>
      %47 = tpu.memref_squeeze %46 : memref<1x8x256xf32, #tpu.memory_space<any>> -> memref<8x256xf32, #tpu.memory_space<any>>
      %c0_i32_30 = arith.constant 0 : i32
      %c0_i32_31 = arith.constant 0 : i32
      %48 = tpu.memref_slice %arg7[%43, %c0_i32_30, %c0_i32_31] : memref<2x8x256xf32, #tpu.memory_space<vmem>> -> memref<1x8x256xf32, #tpu.memory_space<vmem>>
      %49 = tpu.memref_squeeze %48 : memref<1x8x256xf32, #tpu.memory_space<vmem>> -> memref<8x256xf32, #tpu.memory_space<vmem>>
      %50 = tpu.memref_slice %arg8[%43] : memref<2x!tpu.dma_semaphore, #tpu.memory_space<semaphore_mem>> -> memref<1x!tpu.dma_semaphore, #tpu.memory_space<semaphore_mem>>
      %51 = tpu.memref_squeeze %50 : memref<1x!tpu.dma_semaphore, #tpu.memory_space<semaphore_mem>> -> memref<!tpu.dma_semaphore, #tpu.memory_space<semaphore_mem>>
      tpu.enqueue_dma source(%47 : memref<8x256xf32, #tpu.memory_space<any>>) target(%49 : memref<8x256xf32, #tpu.memory_space<vmem>>) target_semaphore(%51 : memref<!tpu.dma_semaphore, #tpu.memory_space<semaphore_mem>>)
    } else {
    }
    %c0 = arith.constant 0 : index
    %c0_7 = arith.constant 0 : index
    %c0_8 = arith.constant 0 : index
    %16 = vector.load %arg4[%c0, %c0_7, %c0_8] : memref<3x8x8xf32, #tpu.memory_space<vmem>>, vector<1x8x8xf32>
    %17 = vector.shape_cast %16 : vector<1x8x8xf32> to vector<8x8xf32>
    %18 = arith.index_cast %0 : i32 to index
    %c0_9 = arith.constant 0 : index
    %c0_10 = arith.constant 0 : index
    %19 = vector.load %arg7[%18, %c0_9, %c0_10] : memref<2x8x256xf32, #tpu.memory_space<vmem>>, vector<1x8x128xf32>
    %20 = vector.shape_cast %19 : vector<1x8x128xf32> to vector<8x128xf32>
    %cst = arith.constant dense<0.000000e+00> : vector<8x128xf32>
    %21 = tpu.matmul %17, %20, %cst {dimension_numbers = #tpu.dot_dimension_numbers<[1], [0], [0], [1], [0, 0, 1, 1], [], []>} : vector<8x8xf32>, vector<8x128xf32>, vector<8x128xf32> -> vector<8x128xf32>
    %c1 = arith.constant 1 : index
    %c0_11 = arith.constant 0 : index
    %c0_12 = arith.constant 0 : index
    %22 = vector.load %arg4[%c1, %c0_11, %c0_12] : memref<3x8x8xf32, #tpu.memory_space<vmem>>, vector<1x8x8xf32>
    %23 = vector.shape_cast %22 : vector<1x8x8xf32> to vector<8x8xf32>
    %24 = arith.index_cast %0 : i32 to index
    %c0_13 = arith.constant 0 : index
    %c1_14 = arith.constant 1 : index
    %25 = vector.load %arg7[%24, %c0_13, %c1_14] : memref<2x8x256xf32, #tpu.memory_space<vmem>>, vector<1x8x128xf32>
    %26 = vector.shape_cast %25 : vector<1x8x128xf32> to vector<8x128xf32>
    %cst_15 = arith.constant dense<0.000000e+00> : vector<8x128xf32>
    %27 = tpu.matmul %23, %26, %cst_15 {dimension_numbers = #tpu.dot_dimension_numbers<[1], [0], [0], [1], [0, 0, 1, 1], [], []>} : vector<8x8xf32>, vector<8x128xf32>, vector<8x128xf32> -> vector<8x128xf32>
    %28 = arith.addf %21, %27 : vector<8x128xf32>
    %c2 = arith.constant 2 : index
    %c0_16 = arith.constant 0 : index
    %c0_17 = arith.constant 0 : index
    %29 = vector.load %arg4[%c2, %c0_16, %c0_17] : memref<3x8x8xf32, #tpu.memory_space<vmem>>, vector<1x8x8xf32>
    %30 = vector.shape_cast %29 : vector<1x8x8xf32> to vector<8x8xf32>
    %31 = arith.index_cast %0 : i32 to index
    %c0_18 = arith.constant 0 : index
    %c2_19 = arith.constant 2 : index
    %32 = vector.load %arg7[%31, %c0_18, %c2_19] : memref<2x8x256xf32, #tpu.memory_space<vmem>>, vector<1x8x128xf32>
    %33 = vector.shape_cast %32 : vector<1x8x128xf32> to vector<8x128xf32>
    %cst_20 = arith.constant dense<0.000000e+00> : vector<8x128xf32>
    %34 = tpu.matmul %30, %33, %cst_20 {dimension_numbers = #tpu.dot_dimension_numbers<[1], [0], [0], [1], [0, 0, 1, 1], [], []>} : vector<8x8xf32>, vector<8x128xf32>, vector<8x128xf32> -> vector<8x128xf32>
    %35 = arith.addf %28, %34 : vector<8x128xf32>
    %c0_21 = arith.constant 0 : index
    %c0_22 = arith.constant 0 : index
    %36 = vector.load %arg5[%c0_21, %c0_22] : memref<8x1xf32, #tpu.memory_space<vmem>>, vector<8x1xf32>
    %37 = vector.broadcast %36 : vector<8x1xf32> to vector<8x128xf32>
    %38 = arith.addf %35, %37 : vector<8x128xf32>
    %c0_23 = arith.constant 0 : index
    %c0_24 = arith.constant 0 : index
    %c0_25 = arith.constant 0 : index
    %39 = vector.load %arg6[%c0_23, %c0_24, %c0_25] : memref<1x8x128xf32, #tpu.memory_space<vmem>>, vector<1x8x128xf32>
    %40 = vector.shape_cast %39 : vector<1x8x128xf32> to vector<8x128xf32>
    %41 = vector.shape_cast %38 : vector<8x128xf32> to vector<1x8x128xf32>
    tpu.vector_store %arg6[%c0_23, %c0_24, %c0_25], %41 {strides = array<i32>} : memref<1x8x128xf32, #tpu.memory_space<vmem>>, vector<1x8x128xf32>,
    return
  }
  func.func @transform_1(%arg0: i32, %arg1: i32, %arg2: i32) -> (i32, i32, i32) {
    %c0_i32 = arith.constant 0 : i32
    %c0_i32_0 = arith.constant 0 : i32
    %c0_i32_1 = arith.constant 0 : i32
    return %c0_i32, %arg1, %c0_i32_0 : i32, i32, i32
  }
  func.func @transform_2(%arg0: i32, %arg1: i32, %arg2: i32) -> (i32, i32) {
    %c0_i32 = arith.constant 0 : i32
    %c0_i32_0 = arith.constant 0 : i32
    return %arg1, %c0_i32 : i32, i32
  }
  func.func @transform_3(%arg0: i32, %arg1: i32, %arg2: i32) -> (i32, i32, i32) {
    %c0_i32 = arith.constant 0 : i32
    return %arg0, %arg1, %arg2 : i32, i32, i32
  }
}

</mosaic_0001>

<bundles_post_ra>
// kernel: tpu_custom_call.1
= control target key start
LH: loop header
LB: loop body
LE: loop exit
PB: predicated region body
PF: predicated region fallthrough
CT: control target
= control target key end

     0   :  { %8 = vsyncpa [#allocation5], 0  ;;  %s1063_s0 = inlined_call_operand.hbm [shape: f32[2,8,256], index: 0, kind: input, shape index: {}]   ;;  %s1064_s1 = inlined_call_operand.hbm [shape: f32[3,8,8], index: 1, kind: input, shape index: {}]   ;;  %s1065_s2 = inlined_call_operand.vmem [shape: f32[8,1], index: 2, kind: input, shape index: {}]   ;;  %s1066_s3 = inlined_call_operand.hbm [shape: f32[2,8,128], index: 3, kind: output, shape index: {}]  }
   0x1   :  { %9 = vsyncpa [#allocation6], 0 }
   0x2   :  { %11 = vsyncpa [#allocation6 + $0x1], 0  ;;  %s918_s12 = smov 0   ;;  %s920_s13 = smov 0  }
   0x3   :  { %s922_s14 = smov 0   ;;  %s924_s15 = smov 0  }
   0x4   :  { %s926_s16 = smov 0   ;;  %s928_s17 = smov 0  }
   0x5 LB: > { %s636_s18 = sadd.s32 4294967295, %s886_s17   ;;  %s637_s19 = sadd.s32 4294967294, %s886_s17   ;;  %s886_s17 = sphi %s928_s17, %s17_s17   ;;  %s882_s16 = sphi %s926_s16, %s1075_s16   ;;  %s878_s15 = sphi %s924_s15, %s1074_s15   ;;  %s874_s14 = sphi %s922_s14, %s1073_s14   ;;  %s870_s13 = sphi %s920_s13, %s1072_s13   ;;  %s866_s12 = sphi %s918_s12, %s1071_s12  }
   0x6   : > { %s36_s20 = sadd.s32 1, %s882_s16  ;;  %s99_s21 = sadd.s32 1, %s874_s14 }
   0x7   : > { %p38_p0 = scmp.ge.s32.totalorder %s36_s20, 2  ;;  %p109_p1 = scmp.ne.s32.totalorder %s874_s14, %s870_s13 }
   0x8   : > { %p110_p2 = scmp.eq.s32.totalorder %s636_s18, 1  ;;  %p115_p3 = scmp.ne.s32.totalorder %s870_s13, %s866_s12 }
   0x9   : > { %s1077_s20 = smov (%p38_p0, %s36_s20), 0  ;;  %p116_p5 = scmp.eq.s32.totalorder %s637_s19, 1 }
   0xa   : > { %p958_p4 = por %p110_p2, %p109_p1  ;;  %s92_s23 = ssub.s32 %s882_s16, %s1077_s20 }
   0xb   : > { %p638_p6 = scmp.ge.s32.totalorder %s886_s17, 1  ;;  %p97_p7 = scmp.eq.s32.totalorder %s92_s23, 0 }
   0xc   : > { %p965_p8 = por %p116_p5, %p115_p3  ;;  %p123_p9 = scmp.lt.s32.totalorder %s886_s17, 3 }
   0xd   : > { %s971_s25 = scalar_select %p97_p7, %s874_s14, %s99_s21  }
   0xe   : > { %p973_p10 = pnand %p638_p6, %p123_p9  ;;  %p977_p11 = scmp.eq.s32.totalorder %s636_s18, 0 }
   0xf   : > { %s888_s28 = smov [#allocation4]  }
  0x10   : > { %p687_p12 = pneg %p973_p10  ;;  %s137_s29 = sshll.u32 %s888_s28, 4  ;;  %s138_s29 = int_to_ptr.vmem [resolvable:$true] %s137_s29 }
  0x11   : > { %s767_s30 = scalar_lea.vmem %s138_s29, 384  ;;  %p775_p5 = scmp.lt.s32.totalorder %s138_s29, %s138_s29 }
  0x12   : > { %p688_p13 = pnand %p977_p11, %p687_p12  ;;  %p768_p1 = scmp.ne.s32.totalorder %s138_s29, %s767_s30 }
  0x13   : > { %p776_p6 = scmp.lt.s32.totalorder %s767_s30, %s767_s30 }
  0x14   : > { %p758_p0 = pneg %p688_p13 }
  0x15   : > { %p777_p7 = por %p776_p6, %p775_p5 }
  0x16   : > { %p770_p2 = pnand %p768_p1, %p758_p0 }
  0x18   : > { %p771_p3 = pneg %p770_p2 }
  0x1a   : > { %p778_p9 = pnand %p777_p7, %p771_p3 }
  0x1c   : > { %781 = shalt.err (!%p778_p9)
}
  0x1d   : > { %s889_s4 = smov 128   ;;  %s890_s5 = smov 8  }
  0x1e   : > { %690 = dma.hbm_to_vmem [thread:$0]  (!%p688_p13), %s1064_s1, 384, %s138_s29, [#allocation5], %s889_s4, %s889_s4, %s890_s5  }
  0x1f   : > { %160 = sbr.rel (%p973_p10) target bundleno = 400 (0x190), region = 28 }
  0x24   : > { %855 = dma.done.wait (%p977_p11), [#allocation5], 384  }
  0x25   : > { %857 = vsyncadd (%p977_p11), [#allocation5], 4294966912  ;;  %s178_s8 = sand.u32 1, %s870_s13   ;;  %s657_s9 = sshll.u32 %s878_s15, 8 }
  0x26   : > { %s998_s10 = sshll.u32 %s178_s8, 3  ;;  %s196_s19 = scalar_lea.hbm %s1063_s0, %s657_s9 }
  0x27   : > { %s891_s21 = smov [#allocation2]   ;;  %s782_s26 = scalar_lea.hbm %s196_s19, 256 }
  0x28   : > { %s208_s23 = sshll.u32 %s891_s21, 4  ;;  %p783_p10 = scmp.ne.s32.totalorder %s196_s19, %s782_s26  ;;  %s209_s23 = int_to_ptr.vmem [resolvable:$true] %s208_s23 }
  0x29   : > { %s784_s29 = scalar_lea.hbm %s1063_s0, 512  ;;  %p785_p11 = scmp.lt.s32.totalorder %s196_s19, %s1063_s0 }
  0x2a   : > { %p786_p12 = scmp.lt.s32.totalorder %s784_s29, %s782_s26 }
  0x2c   : > { %p787_p13 = por %p786_p12, %p785_p11 }
  0x2e   : > { %p788_p0 = pnand %p787_p13, %p783_p10 }
  0x30   : > { %791 = shalt.err (!%p788_p0)  }
  0x31   : > { %s792_s5 = scalar_lea.vmem %s209_s23, 256  ;;  %s796_s6 = scalar_lea.vmem %s209_s23, 512 }
  0x32   : > { %p793_p1 = scmp.ne.s32.totalorder %s209_s23, %s792_s5  ;;  %p797_p2 = scmp.lt.s32.totalorder %s209_s23, %s209_s23 }
  0x33   : > { %p798_p3 = scmp.lt.s32.totalorder %s796_s6, %s792_s5 }
  0x35   : > { %p799_p5 = por %p798_p3, %p797_p2 }
  0x37   : > { %p800_p6 = pnand %p799_p5, %p793_p1 }
  0x39   : > { %803 = shalt.err (!%p800_p6)  }
  0x3a   : > { %211 = dma.hbm_to_vmem [thread:$0]  %s196_s19, 256, %s209_s23, [#allocation3] }
  0x3b   : > { %s180_s7 = scalar_lea.vmem [#allocation7], %s998_s10 }
  0x3c   : > { %858 = dma.done.wait [#allocation3], 256 }
  0x3d   : > { %859 = vsyncadd [#allocation3], 4294967040  ;;  %v892_v0 = vmov 0.0   ;;  %vm893_vm0 = vmmov 0   ;;  %v894_v1 = vmov 0   ;;  %v250_v2 = vld [vmem:[#allocation2] sm:$0xff] }
  0x3e   : > { %666 = vmatprep.subr.mxu0 %v892_v0  ;;  %671 = vmatprep.subr.mxu1 %v892_v0  ;;  %vm263_vm1 = vcmask 64512   ;;  %s895_s9 = smov 126   ;;  %s896_s11 = smov 127   ;;  %v249_v3 = vld [vmem:[#allocation4] sm:$0xff]  ;;  %v253_v4 = vld [vmem:[#allocation2 + $0x8] sm:$0xff]  ;;  %vm260_vm2 = vcmask 1039360  }
  0x3f   : > { %668 = vmatprep.mubr.msk.f32.mxu0 %vm893_vm0, %v892_v0  ;;  %673 = vmatprep.mubr.msk.f32.mxu1 %vm893_vm0, %v892_v0  ;;  %v493_v5 = vld [vmem:[%s1065_s2] sm:$0xff]  ;;  %vm416_vm3 = vcmask 1031168   ;;  %v252_v10 = vld [vmem:[#allocation4 + $0x8] sm:$0xff]  ;;  %v411_v13 = vld [vmem:[#allocation4 + $0x10] sm:$0xff]  ;;  %s652_s21 = sshll.u32 %s878_s15, 7  ;;  %s517_s23 = sshll.u32 %s180_s7, 4  ;;  %s518_s23 = int_to_ptr.vmem [resolvable:$true] %s517_s23 }
  0x40   : > { %755 = vset.pattern.permute.xlu0 %v894_v1  ;;  %412 = vrot.lane.b32.xlu1 %v250_v2, %s895_s9  ;;  %s515_s27 = scalar_lea.hbm %s1066_s3, %s652_s21  ;;  %s502_s29 = scalar_lea.sflag [#allocation6], %s178_s8 }
  0x41   : > { %256 = vrot.lane.b32.xlu0 %v250_v2, %s896_s11  ;;  %672 = vmatpush3.msra.mxu1 %v250_v2  ;;  %s804_s30 = scalar_lea.vmem %s518_s23, 128  ;;  %s897_s15 = smov [#allocation7]  }
  0x42   : > { %674 = vmatmul.mubr.msk.f32.vlgmr.msra.gmra.mxu1 %vm263_vm1, %v249_v3  ;;  %p805_p7 = scmp.ne.s32.totalorder %s518_s23, %s804_s30  ;;  %s808_s4 = sshll.u32 %s897_s15, 4  ;;  %s809_s4 = int_to_ptr.vmem [resolvable:$false] %s808_s4 }
  0x43   : > { %s810_s5 = scalar_lea.vmem %s809_s4, 256  ;;  %p811_p11 = scmp.lt.s32.totalorder %s518_s23, %s809_s4 }
  0x44   : > { %414 = vrot.lane.b32.xlu1 %v253_v4, %s895_s9  ;;  %p806_p9 = pnand %p805_p7, %p958_p4  ;;  %p812_p12 = scmp.lt.s32.totalorder %s810_s5, %s804_s30 }
  0x45   : > { %258 = vrot.lane.b32.xlu0 %v253_v4, %s896_s11 }
  0x46   : > { %p807_p10 = pneg %p806_p9  ;;  %p813_p13 = por %p812_p12, %p811_p11 }
  0x48   : > { %p814_p0 = pnand %p813_p13, %p807_p10 }
  0x49   : > { %496 = vperm.xlu0 %755, %v493_v5  }
  0xb2   : > { %v413_v6 = vpop.permute.xlu1 %412 }
  0xb3   : > { %v257_v7 = vpop.permute.xlu0 %256 }
  0xb6   : > { %v415_v8 = vpop.permute.xlu1 %414 }
  0xb7   : > { %v259_v9 = vpop.permute.xlu0 %258  ;;  %v417_v12 = vsel %vm416_vm3, %v413_v6, %v415_v8 }
  0xb8   : > { %v261_v11 = vsel %vm260_vm2, %v257_v7, %v259_v9 }
  0xb9   : > { %667 = vmatpush3.msra.mxu0 %v261_v11 }
  0xba   : > { %669 = vmatmul.mubr.msk.f32.vlgmr.msra.gmra.mxu0 %vm263_vm1, %v252_v10  ;;  %676 = vmatprep.subr.mxu0 %v892_v0 }
  0xbb   : > { %677 = vmatpush3.msra.mxu0 %v417_v12  ;;  %678 = vmatprep.mubr.msk.f32.mxu0 %vm893_vm0, %v892_v0 }
  0xbe   : > { %679 = vmatmul.mubr.msk.f32.vlgmr.msra.gmra.mxu0 %vm263_vm1, %v411_v13 }
  0xc4   : > { %v497_v20 = vpop.permute.xlu0 %496 }
 0x102   : > { %v406_v14 = vpop.f32.mrf.mxu1 }
 0x104   : > { %v675_v15 = vpop.f32.mrf.mxu1 }
 0x17a   : > { %v333_v16 = vpop.f32.mrf.mxu0 }
 0x17b   : > { %v407_v18 = vadd.f32 %v406_v14, %v333_v16 }
 0x17c   : > { %v670_v17 = vpop.f32.mrf.mxu0 }
 0x17e   : > { %v488_v19 = vpop.f32.mrf.mxu0 }
 0x17f   : > { %v492_v21 = vadd.f32 %v488_v19, %v407_v18 }
 0x180   : > { %v680_v22 = vpop.f32.mrf.mxu0 }
 0x181   : > { %v499_v23 = vadd.f32 %v497_v20, %v492_v21 }
 0x183   : > { %500 = vst [vmem:[%s180_s7] sm:$0xff] %v499_v23 }
 0x184   : > { %817 = shalt.err (!%p814_p0)
}
 0x185   : > { %s818_s6 = scalar_lea.hbm %s515_s27, 128  ;;  %s822_s7 = scalar_lea.hbm %s1066_s3, 256 }
 0x186   : > { %p819_p1 = scmp.ne.s32.totalorder %s515_s27, %s818_s6  ;;  %p823_p5 = scmp.lt.s32.totalorder %s515_s27, %s1066_s3 }
 0x187   : > { %p824_p6 = scmp.lt.s32.totalorder %s822_s7, %s818_s6 }
 0x188   : > { %p820_p2 = pnand %p819_p1, %p958_p4 }
 0x189   : > { %p825_p7 = por %p824_p6, %p823_p5 }
 0x18a   : > { %p821_p3 = pneg %p820_p2 }
 0x18c   : > { %p826_p9 = pnand %p825_p7, %p821_p3 }
 0x18e   : > { %829 = shalt.err (!%p826_p9)
}
 0x18f   : > { %685 = dma.vmem_to_hbm [thread:$0]  (%p958_p4), %s518_s23, 128, %s515_s27, %s502_s29  }
 0x190 PF: > { %p697_p10 = scmp.ge.s32.totalorder %s886_s17, 2  ;;  %s529_s18 = sand.u32 1, %s866_s12  }
 0x191   : > { %s530_s19 = scalar_lea.sflag [#allocation6], %s529_s18 }
 0x192   : > { %p692_p11 = pnand %p697_p10, %p965_p8 }
 0x194   : > { %p693_p12 = pneg %p692_p11 }
 0x196   : > { %861 = dma.done.wait (%p693_p12), %s530_s19, 128  }
 0x197   : > { %863 = vsyncadd (%p693_p12), %s530_s19, 4294967168  ;;  %s17_s17 = sadd.s32 1, %s886_s17   ;;  %s1071_s12 = smov %s870_s13 }
 0x198   : > { %p14_p13 = scmp.ge.s32.totalorder %s17_s17, 4   ;;  %s1072_s13 = smov %s874_s14 }
 0x199   : > { %s1073_s14 = smov %s971_s25  ;;  %s1074_s15 = smov %s882_s16 }
 0x19a   : > { %s1075_s16 = smov %s1077_s20  ;;  %16 = sbr.rel (!%p14_p13) target bundleno = 5 (0x5), region = 96 }
 0x19f   :  { %535 = vsyncpa [#allocation5], 1 }
 0x1a0   :  { %537 = vsyncpa [#allocation5 + $0x1], 1 }
 0x1a1   :  { %538 = vsyncpa [#allocation6], 1 }
 0x1a2   :  { %540 = vsyncpa [#allocation6 + $0x1], 1 }
 0x1a3   :  { %541 = vsyncmov [#allocation3] }
 0x1a6   :  { %s542_s22 = vpop.sfrf %541 }
 0x1a7   :  { %p655_p4 = scmp.ne.s32.totalorder %s542_s22, 0 }
 0x1a9   :  { %546 = shalt.err (%p655_p4)  }
 0x1aa   :  { %548 = vsyncmov [#allocation3 + $0x1] }
 0x1ad   :  { %s549_s24 = vpop.sfrf %548 }
 0x1ae   :  { %p656_p8 = scmp.ne.s32.totalorder %s549_s24, 0 }
 0x1b0   :  { %553 = shalt.err (%p656_p8)  }

</bundles_post_ra>
